<compile_context>
chip_gen: v7x
topology: tpu7x:2x2x1
jax: 0.10.0
libtpu: 0.0.40
codegen_flags: <defaults>
</compile_context>

<pallas_src>
import jax
import jax.numpy as jnp
from jax.experimental import pallas as pl


def textrnn_kernel(x_ref, h0_ref, wih_ref, whh_ref, bias_ref, w_ref, b_ref,
                   out_ref):
    """Single-invocation TextRNN forward.

    x_ref    : (B, T, C)  batch-major one-hot inputs (whole array in VMEM)
    h0_ref   : (B, H)     initial hidden state
    wih_ref  : (C, H)     input->hidden weight, pre-transposed
    whh_ref  : (H, H)     hidden->hidden weight, pre-transposed
    bias_ref : (1, H)     b_ih + b_hh (pre-summed in the wrapper)
    w_ref    : (H, C)     final projection W
    b_ref    : (1, C)     final projection bias
    out_ref  : (B, C)     output logits
    """
    T = x_ref.shape[1]

    wih = wih_ref[...]
    whh = whh_ref[...]
    bias = bias_ref[...]

    # Input->hidden terms are independent of the recurrent state: compute them
    # all up front so the MXU/EUP critical path of the recurrence is only the
    # H x H matmul + tanh per step.
    u = [
        jnp.dot(x_ref[:, t, :], wih, preferred_element_type=jnp.float32) + bias
        for t in range(T)
    ]

    # Fully unrolled T-step recurrence (T is a static shape, tiny here).
    h = h0_ref[...]
    for t in range(T):
        h = jnp.tanh(u[t] + jnp.dot(h, whh, preferred_element_type=jnp.float32))

    # Final projection on the last hidden state.
    out_ref[...] = (
        jnp.dot(h, w_ref[...], preferred_element_type=jnp.float32) + b_ref[...]
    )


def textrnn_forward(hidden, X, params):
    """hidden: (1, B, H) like PyTorch; X: (B, T, C) batch-major one-hots."""
    w_ih, w_hh, b_ih, b_hh, W, b = (
        params["w_ih"], params["w_hh"], params["b_ih"],
        params["b_hh"], params["W"], params["b"],
    )
    B, T, C = X.shape
    H = w_ih.shape[0]

    h0 = hidden[0].astype(jnp.float32)                       # (B, H)
    # Pre-transpose weights so the kernel does (B, in) @ (in, out) on the MXU.
    wih_t = w_ih.T.astype(jnp.float32)                       # (C, H)
    whh_t = w_hh.T.astype(jnp.float32)                       # (H, H)
    bias = (b_ih + b_hh).reshape(1, H).astype(jnp.float32)   # pre-summed biases
    b2 = b.reshape(1, C).astype(jnp.float32)

    # Single invocation, no grid: every operand fits comfortably in VMEM at
    # these shapes, so default whole-array BlockSpecs are used and the full
    # recurrence runs inside one kernel call (no per-step grid/DMA overhead,
    # no wrapper-side transpose of X).
    out = pl.pallas_call(
        textrnn_kernel,
        out_shape=jax.ShapeDtypeStruct((B, C), jnp.float32),
    )(X.astype(jnp.float32), h0, wih_t, whh_t, bias,
      W.astype(jnp.float32), b2)
    return out


def textrnn_reference(hidden, X, params):
    """Pure-JAX reference matching nn.RNN(tanh) + final linear."""
    x_tm = jnp.transpose(X, (1, 0, 2)).astype(jnp.float32)
    h = hidden[0].astype(jnp.float32)
    for t in range(x_tm.shape[0]):
        h = jnp.tanh(x_tm[t] @ params["w_ih"].T + params["b_ih"]
                     + h @ params["w_hh"].T + params["b_hh"])
    return h @ params["W"] + params["b"]


if __name__ == "__main__":
    # Shapes implied by the original script:
    #   sentences = ['i like dog', 'i love coffee', 'i hate milk']
    #   batch=3, seq_len=2 (first two words as input), n_hidden=5, n_class=7
    batch_size = 3
    seq_len = 2
    n_hidden = 5
    n_class = 7

    key = jax.random.PRNGKey(0)
    k1, k2, k3, k4, k5, k6, k7 = jax.random.split(key, 7)

    # Deterministic synthetic parameters (shapes follow nn.RNN / nn.Parameter).
    scale = 1.0 / jnp.sqrt(jnp.float32(n_hidden))
    params = {
        "w_ih": jax.random.uniform(k1, (n_hidden, n_class), jnp.float32, -scale, scale),
        "w_hh": jax.random.uniform(k2, (n_hidden, n_hidden), jnp.float32, -scale, scale),
        "b_ih": jax.random.uniform(k3, (n_hidden,), jnp.float32, -scale, scale),
        "b_hh": jax.random.uniform(k4, (n_hidden,), jnp.float32, -scale, scale),
        "W": jax.random.normal(k5, (n_hidden, n_class), jnp.float32),
        "b": jax.random.normal(k6, (n_class,), jnp.float32),
    }

    # One-hot style input batch (B, T, C), like the original input_batch.
    idx = jax.random.randint(k7, (batch_size, seq_len), 0, n_class)
    X = jax.nn.one_hot(idx, n_class, dtype=jnp.float32)          # (B, T, C)
    hidden = jnp.zeros((1, batch_size, n_hidden), jnp.float32)   # (1, B, H)

    out = textrnn_forward(hidden, X, params)
    out = jax.block_until_ready(out)

    ref = textrnn_reference(hidden, X, params)
    assert out.shape == (batch_size, n_class)
    assert jnp.allclose(out, ref, atol=1e-5, rtol=1e-5), (out, ref)

    print("KERNEL_OK")
</pallas_src>

<mosaic_0001>
module attributes {stable_mosaic.version = 11 : i64} {
  func.func @textrnn_kernel(%arg0: memref<3x2x7xf32, #tpu.memory_space<vmem>>, %arg1: memref<3x5xf32, #tpu.memory_space<vmem>>, %arg2: memref<7x5xf32, #tpu.memory_space<vmem>>, %arg3: memref<5x5xf32, #tpu.memory_space<vmem>>, %arg4: memref<1x5xf32, #tpu.memory_space<vmem>>, %arg5: memref<5x7xf32, #tpu.memory_space<vmem>>, %arg6: memref<1x7xf32, #tpu.memory_space<vmem>>, %arg7: memref<3x7xf32, #tpu.memory_space<vmem>>) attributes {dimension_semantics = [], scalar_prefetch = 0 : i64, scratch_operands = 0 : i64, tpu.core_type = #tpu.core_type<tc>} {
    %c0 = arith.constant 0 : index
    %c0_0 = arith.constant 0 : index
    %0 = vector.load %arg2[%c0, %c0_0] : memref<7x5xf32, #tpu.memory_space<vmem>>, vector<7x5xf32>
    %c0_1 = arith.constant 0 : index
    %c0_2 = arith.constant 0 : index
    %1 = vector.load %arg3[%c0_1, %c0_2] : memref<5x5xf32, #tpu.memory_space<vmem>>, vector<5x5xf32>
    %c0_3 = arith.constant 0 : index
    %c0_4 = arith.constant 0 : index
    %2 = vector.load %arg4[%c0_3, %c0_4] : memref<1x5xf32, #tpu.memory_space<vmem>>, vector<1x5xf32>
    %c0_5 = arith.constant 0 : index
    %c0_6 = arith.constant 0 : index
    %c0_7 = arith.constant 0 : index
    %3 = vector.load %arg0[%c0_5, %c0_6, %c0_7] : memref<3x2x7xf32, #tpu.memory_space<vmem>>, vector<3x1x7xf32>
    %4 = vector.shape_cast %3 : vector<3x1x7xf32> to vector<3x7xf32>
    %cst = arith.constant dense<0.000000e+00> : vector<3x5xf32>
    %5 = tpu.matmul %4, %0, %cst {dimension_numbers = #tpu.dot_dimension_numbers<[1], [0], [0], [1], [0, 0, 1, 1], [], []>} : vector<3x7xf32>, vector<7x5xf32>, vector<3x5xf32> -> vector<3x5xf32>
    %6 = vector.broadcast %2 : vector<1x5xf32> to vector<3x5xf32>
    %7 = arith.addf %5, %6 : vector<3x5xf32>
    %c0_8 = arith.constant 0 : index
    %c1 = arith.constant 1 : index
    %c0_9 = arith.constant 0 : index
    %8 = vector.load %arg0[%c0_8, %c1, %c0_9] : memref<3x2x7xf32, #tpu.memory_space<vmem>>, vector<3x1x7xf32>
    %9 = vector.shape_cast %8 : vector<3x1x7xf32> to vector<3x7xf32>
    %cst_10 = arith.constant dense<0.000000e+00> : vector<3x5xf32>
    %10 = tpu.matmul %9, %0, %cst_10 {dimension_numbers = #tpu.dot_dimension_numbers<[1], [0], [0], [1], [0, 0, 1, 1], [], []>} : vector<3x7xf32>, vector<7x5xf32>, vector<3x5xf32> -> vector<3x5xf32>
    %11 = vector.broadcast %2 : vector<1x5xf32> to vector<3x5xf32>
    %12 = arith.addf %10, %11 : vector<3x5xf32>
    %c0_11 = arith.constant 0 : index
    %c0_12 = arith.constant 0 : index
    %13 = vector.load %arg1[%c0_11, %c0_12] : memref<3x5xf32, #tpu.memory_space<vmem>>, vector<3x5xf32>
    %cst_13 = arith.constant dense<0.000000e+00> : vector<3x5xf32>
    %14 = tpu.matmul %13, %1, %cst_13 {dimension_numbers = #tpu.dot_dimension_numbers<[1], [0], [0], [1], [0, 0, 1, 1], [], []>} : vector<3x5xf32>, vector<5x5xf32>, vector<3x5xf32> -> vector<3x5xf32>
    %15 = arith.addf %7, %14 : vector<3x5xf32>
    %16 = math.tanh %15 : vector<3x5xf32>
    %cst_14 = arith.constant dense<0.000000e+00> : vector<3x5xf32>
    %17 = tpu.matmul %16, %1, %cst_14 {dimension_numbers = #tpu.dot_dimension_numbers<[1], [0], [0], [1], [0, 0, 1, 1], [], []>} : vector<3x5xf32>, vector<5x5xf32>, vector<3x5xf32> -> vector<3x5xf32>
    %18 = arith.addf %12, %17 : vector<3x5xf32>
    %19 = math.tanh %18 : vector<3x5xf32>
    %c0_15 = arith.constant 0 : index
    %c0_16 = arith.constant 0 : index
    %20 = vector.load %arg5[%c0_15, %c0_16] : memref<5x7xf32, #tpu.memory_space<vmem>>, vector<5x7xf32>
    %cst_17 = arith.constant dense<0.000000e+00> : vector<3x7xf32>
    %21 = tpu.matmul %19, %20, %cst_17 {dimension_numbers = #tpu.dot_dimension_numbers<[1], [0], [0], [1], [0, 0, 1, 1], [], []>} : vector<3x5xf32>, vector<5x7xf32>, vector<3x7xf32> -> vector<3x7xf32>
    %c0_18 = arith.constant 0 : index
    %c0_19 = arith.constant 0 : index
    %22 = vector.load %arg6[%c0_18, %c0_19] : memref<1x7xf32, #tpu.memory_space<vmem>>, vector<1x7xf32>
    %23 = vector.broadcast %22 : vector<1x7xf32> to vector<3x7xf32>
    %24 = arith.addf %21, %23 : vector<3x7xf32>
    %c0_20 = arith.constant 0 : index
    %c0_21 = arith.constant 0 : index
    %25 = vector.load %arg7[%c0_20, %c0_21] : memref<3x7xf32, #tpu.memory_space<vmem>>, vector<3x7xf32>
    tpu.vector_store %arg7[%c0_20, %c0_21], %24 {strides = array<i32>} : memref<3x7xf32, #tpu.memory_space<vmem>>, vector<3x7xf32>,
    return
  }
}

</mosaic_0001>

<bundles_post_ra>
// kernel: tpu_custom_call.1
= control target key start
LH: loop header
LB: loop body
LE: loop exit
PB: predicated region body
PF: predicated region fallthrough
CT: control target
= control target key end

     0   :  { %12 = vsyncpa [#allocation3], 0  ;;  %s793_s0 = inlined_call_operand.hbm [shape: f32[3,2,7], index: 0, kind: input, shape index: {}]   ;;  %s794_s1 = inlined_call_operand.hbm [shape: f32[3,5], index: 1, kind: input, shape index: {}]   ;;  %s795_s2 = inlined_call_operand.hbm [shape: f32[7,5], index: 2, kind: input, shape index: {}]   ;;  %s796_s3 = inlined_call_operand.vmem [shape: f32[5,5], index: 3, kind: input, shape index: {}]   ;;  %s797_s4 = inlined_call_operand.vmem [shape: f32[1,5], index: 4, kind: input, shape index: {}]   ;;  %s798_s5 = inlined_call_operand.vmem [shape: f32[5,7], index: 5, kind: input, shape index: {}]   ;;  %s799_s6 = inlined_call_operand.vmem [shape: f32[1,7], index: 6, kind: input, shape index: {}]   ;;  %s800_s7 = inlined_call_operand.hbm [shape: f32[3,7], index: 7, kind: output, shape index: {}]  }
   0x1   :  { %13 = vsyncpa [#allocation6], 0 }
   0x2   :  { %14 = vsyncpa [#allocation4], 0  ;;  %s661_s24 = smov [#allocation5]   ;;  %s662_s26 = smov [#allocation2]  }
   0x3   :  { %s33_s25 = sshll.u32 %s661_s24, 4  ;;  %s20_s27 = sshll.u32 %s662_s26, 4  ;;  %s34_s25 = int_to_ptr.vmem [resolvable:$true] %s33_s25  ;;  %s709_s27 = int_to_ptr.vmem [resolvable:$true] %s20_s27 }
   0x4   :  { %s567_s30 = scalar_lea.hbm %s794_s1, 64 }
   0x5   :  { %p568_p0 = scmp.ne.s32.totalorder %s794_s1, %s567_s30  ;;  %p571_p1 = scmp.lt.u32.totalorder %s567_s30, %s794_s1 }
   0x7   :  { %p573_p2 = pnand %p571_p1, %p568_p0 }
   0x9   :  { %576 = shalt.err (!%p573_p2)
}
   0xa   :  { %s577_s12 = scalar_lea.vmem %s34_s25, 64  ;;  %p582_p4 = scmp.lt.s32.totalorder %s34_s25, %s34_s25 }
   0xb   :  { %p578_p3 = scmp.ne.s32.totalorder %s34_s25, %s577_s12  ;;  %p583_p5 = scmp.lt.s32.totalorder %s577_s12, %s577_s12 }
   0xd   :  { %p584_p6 = por %p583_p5, %p582_p4 }
   0xf   :  { %p585_p7 = pnand %p584_p6, %p578_p3 }
  0x11   :  { %588 = shalt.err (!%p585_p7)
}
  0x12   :  { %36 = dma.hbm_to_vmem [thread:$0]  %s794_s1, 64, %s34_s25, [#allocation6]  }
  0x13   :  { %s589_s17 = scalar_lea.hbm %s793_s0, 96 }
  0x14   :  { %p590_p8 = scmp.ne.s32.totalorder %s793_s0, %s589_s17  ;;  %p593_p9 = scmp.lt.u32.totalorder %s589_s17, %s793_s0 }
  0x16   :  { %p595_p10 = pnand %p593_p9, %p590_p8 }
  0x18   :  { %598 = shalt.err (!%p595_p10)
}
  0x19   :  { %s599_s22 = scalar_lea.vmem %s709_s27, 96  ;;  %p604_p12 = scmp.lt.s32.totalorder %s709_s27, %s709_s27 }
  0x1a   :  { %p600_p11 = scmp.ne.s32.totalorder %s709_s27, %s599_s22  ;;  %p605_p13 = scmp.lt.s32.totalorder %s599_s22, %s599_s22 }
  0x1c   :  { %p606_p0 = por %p605_p13, %p604_p12 }
  0x1e   :  { %p607_p1 = pnand %p606_p0, %p600_p11 }
  0x20   :  { %610 = shalt.err (!%p607_p1)
}
  0x21   :  { %s663_s1 = smov 32   ;;  %s664_s23 = smov 2  }
  0x22   :  { %26 = dma.hbm_to_vmem [thread:$0]  %s793_s0, 96, %s709_s27, [#allocation3], %s663_s1, %s663_s1, %s664_s23  }
  0x23   :  { %s665_s26 = smov [#allocation7]   ;;  %s611_s8 = scalar_lea.hbm %s795_s2, 128 }
  0x24   :  { %s43_s28 = sshll.u32 %s665_s26, 4  ;;  %p612_p2 = scmp.ne.s32.totalorder %s795_s2, %s611_s8  ;;  %s44_s28 = int_to_ptr.vmem [resolvable:$true] %s43_s28 }
  0x25   :  { %p615_p3 = scmp.lt.u32.totalorder %s611_s8, %s795_s2 }
  0x27   :  { %p617_p4 = pnand %p615_p3, %p612_p2 }
  0x29   :  { %620 = shalt.err (!%p617_p4)
}
  0x2a   :  { %s621_s13 = scalar_lea.vmem %s44_s28, 128  ;;  %p626_p6 = scmp.lt.s32.totalorder %s44_s28, %s44_s28 }
  0x2b   :  { %p622_p5 = scmp.ne.s32.totalorder %s44_s28, %s621_s13  ;;  %p627_p7 = scmp.lt.s32.totalorder %s621_s13, %s621_s13 }
  0x2d   :  { %p628_p8 = por %p627_p7, %p626_p6 }
  0x2f   :  { %p629_p9 = pnand %p628_p8, %p622_p5 }
  0x31   :  { %632 = shalt.err (!%p629_p9)
}
  0x32   :  { %46 = dma.hbm_to_vmem [thread:$0]  %s795_s2, 128, %s44_s28, [#allocation6]  }
  0x33   :  { %655 = dma.done.wait [#allocation3], 96  }
  0x34   :  { %656 = vsyncadd [#allocation3], 4294967200 }
  0x35   :  { %657 = dma.done.wait [#allocation6], 192  }
  0x36   :  { %658 = vsyncadd [#allocation6], 4294967104  ;;  %v666_v0 = vmov 0.0   ;;  %vm667_vm0 = vmmov 0   ;;  %vm88_vm1 = vcmask 1046528   ;;  %vm80_vm2 = vcmask 1041409  }
  0x37   :  { %524 = vmatprep.subr.mxu0 %v666_v0  ;;  %526 = vmatprep.mubr.msk.f32.mxu0 %vm667_vm0, %v666_v0  ;;  %v64_v1 = vld [vmem:[#allocation7] sm:$0x7f]  ;;  %v67_v2 = vld [vmem:[#allocation2] sm:$0x1]  ;;  %v68_v3 = vld [vmem:[#allocation2 + $0x2] sm:$0x1] }
  0x38   :  { %529 = vmatprep.subr.mxu1 %v666_v0  ;;  %531 = vmatprep.mubr.msk.f32.mxu1 %vm667_vm0, %v666_v0  ;;  %v69_v4 = vld [vmem:[#allocation2 + $0x4] sm:$0x1]  ;;  %v79_v5 = vrot.slane %v68_v3, 7  ;;  %vm83_vm3 = vcmask 1042434   ;;  %vm85_vm4 = vcmask 56320   ;;  %vm249_vm5 = vcmask 1044480  }
  0x39   :  { %525 = vmatpush3.msk.msra.mxu0 %vm88_vm1, %v64_v1  ;;  %530 = vmatpush3.msk.msra.mxu1 %vm88_vm1, %v64_v1  ;;  %v82_v6 = vrot.slane %v69_v4, 6  ;;  %v65_v8 = vld [vmem:[%s796_s3] sm:$0x1f]  ;;  %v244_v10 = vld [vmem:[#allocation5] sm:$0x7]  ;;  %vm245_vm6 = vcmask 39936  }
  0x3a   :  { %534 = vmatprep.subr.mxu0 %v666_v0  ;;  %539 = vmatprep.subr.mxu1 %v666_v0  ;;  %v81_v7 = vsel %vm80_vm2, %v79_v5, %v67_v2  ;;  %v163_v11 = vld [vmem:[#allocation2 + $0x3] sm:$0x1]  ;;  %v164_v12 = vld [vmem:[#allocation2 + $0x5] sm:$0x1]  ;;  %v162_v14 = vld [vmem:[#allocation2 + $0x1] sm:$0x1] }
  0x3b   :  { %v84_v9 = vsel %vm83_vm3, %v82_v6, %v81_v7  ;;  %v168_v13 = vrot.slane %v163_v11, 7  ;;  %v170_v15 = vrot.slane %v164_v12, 6  ;;  %v502_v18 = vld [vmem:[%s797_s4] ss:$0 sm:$0xff]  ;;  %s668_s19 = smov [#allocation8]   ;;  %vm484_vm7 = vcmask 51200  }
  0x3c   :  { %527 = vmatmul.mubr.msk.f32.vlgmr.msra.gmra.mrb[0].mxu0 %vm85_vm4, %v84_v9  ;;  %v400_v23 = vld [vmem:[%s798_s5] sm:$0x1f]  ;;  %s492_s20 = sshll.u32 %s668_s19, 4  ;;  %s493_s20 = int_to_ptr.vmem [resolvable:$true] %s492_s20 }
  0x3d   :  { %535 = vmatpush3.msk.msra.mxu0 %vm249_vm5, %v65_v8  ;;  %536 = vmatprep.mubr.msk.f32.mxu0 %vm667_vm0, %v666_v0  ;;  %v169_v16 = vsel %vm80_vm2, %v168_v13, %v162_v14  ;;  %v511_v28 = vld [vmem:[%s799_s6] ss:$0 sm:$0xff]  ;;  %s633_s5 = scalar_lea.vmem %s493_s20, 64  ;;  %p638_p11 = scmp.lt.s32.totalorder %s493_s20, %s493_s20 }
  0x3e   :  { %544 = vmatprep.subr.mxu0 %v666_v0  ;;  %v171_v17 = vsel %vm83_vm3, %v170_v15, %v169_v16  ;;  %p634_p10 = scmp.ne.s32.totalorder %s493_s20, %s633_s5  ;;  %p639_p12 = scmp.lt.s32.totalorder %s633_s5, %s633_s5 }
  0x3f   :  { %532 = vmatmul.mubr.msk.f32.vlgmr.msra.gmra.mrb[0].mxu1 %vm85_vm4, %v171_v17 }
  0x40   :  { %540 = vmatpush3.msk.msra.mxu1 %vm249_vm5, %v65_v8  ;;  %541 = vmatprep.mubr.msk.f32.mxu1 %vm667_vm0, %v666_v0  ;;  %p640_p13 = por %p639_p12, %p638_p11 }
  0x42   :  { %p641_p0 = pnand %p640_p13, %p634_p10 }
  0x44   :  { %537 = vmatmul.mubr.msk.f32.vlgmr.msra.gmra.mrb[0].mxu0 %vm245_vm6, %v244_v10 }
  0x45   :  { %546 = vmatprep.mubr.msk.f32.mxu0 %vm667_vm0, %v666_v0  ;;  %545 = vmatpush3.msk.msra.mxu0 %vm249_vm5, %v400_v23 }
 0x117   :  { %v319_v19 = vpop.f32.mrb[0].mxu0 }
 0x118   :  { %v549_v20 = vadd.f32 %v502_v18, %v319_v19  ;;  %v538_v21 = vpop.f32.mrb[1].mxu0 }
 0x11a   :  { %563 = vtanh.f32 %v549_v20 }
 0x124   :  { %v564_v22 = vpop.eup %563 }
 0x125   :  { %542 = vmatmul.mubr.msk.f32.vlgmr.msra.gmra.mrb[0].mxu1 %vm245_vm6, %v564_v22 }
 0x1f8   :  { %v394_v24 = vpop.f32.mrb[0].mxu1 }
 0x1f9   :  { %v550_v25 = vadd.f32 %v502_v18, %v394_v24  ;;  %v543_v26 = vpop.f32.mrb[1].mxu1 }
 0x1fb   :  { %565 = vtanh.f32 %v550_v25 }
 0x205   :  { %v566_v27 = vpop.eup %565 }
 0x206   :  { %547 = vmatmul.mubr.msk.f32.vlgmr.msra.gmra.mrb[2].mxu0 %vm245_vm6, %v566_v27 }
 0x2d9   :  { %v480_v29 = vpop.f32.mrb[2].mxu0 }
 0x2da   :  { %v481_v30 = vadd.f32 %v511_v28, %v480_v29  ;;  %v548_v31 = vpop.f32.mrb[3].mxu0 }
 0x2dc   :  { %485 = vst.msk [vmem:[#allocation8] sm:$0x7] %vm484_vm7, %v481_v30 }
 0x2dd   :  { %644 = shalt.err (!%p641_p0)
}
 0x2de   :  { %s645_s1 = scalar_lea.hbm %s800_s7, 64 }
 0x2df   :  { %p646_p1 = scmp.ne.s32.totalorder %s800_s7, %s645_s1  ;;  %p649_p2 = scmp.lt.u32.totalorder %s645_s1, %s800_s7 }
 0x2e1   :  { %p651_p3 = pnand %p649_p2, %p646_p1 }
 0x2e3   :  { %654 = shalt.err (!%p651_p3)
}
 0x2e4   :  { %495 = dma.vmem_to_hbm [thread:$0]  %s493_s20, 64, %s800_s7, [#allocation4]  }
 0x2e5   :  { %659 = dma.done.wait [#allocation4], 64  }
 0x2e6   :  { %660 = vsyncadd [#allocation4], 4294967232 }
 0x2e7   :  { %499 = vsyncpa [#allocation3], 1 }
 0x2e8   :  { %500 = vsyncpa [#allocation6], 1 }
 0x2e9   :  { %501 = vsyncpa [#allocation4], 1 }

</bundles_post_ra>
